<compile_context>
chip_gen: v5e
topology: v5e:2x2
jax: 0.10.0
libtpu: 0.0.40
codegen_flags: <defaults>
</compile_context>

<pallas_src>
import math
import functools

import jax
import jax.numpy as jnp
from jax.experimental import pallas as pl
from jax.experimental.pallas import tpu as pltpu


_VMEM_LIMIT = 32 * 1024 * 1024  # safe on v5e/v6e (128 MiB phys) and v7x (64 MiB phys)


def _idx2_const(i):
    return (0, 0)


# ----------------------------------------------------------------------------
# LayerNorm math (eps matches PyTorch nn.LayerNorm default)
# ----------------------------------------------------------------------------
def _ln_math(z, g, b, eps=1e-5):
    mu = jnp.mean(z, axis=-1, keepdims=True)
    zc = z - mu
    var = jnp.mean(zc * zc, axis=-1, keepdims=True)
    inv = jax.lax.rsqrt(var + eps)
    return zc * inv * g + b


# ----------------------------------------------------------------------------
# Kernel 1: fused MHA + residual add + norm1 (one batch element per grid step)
# ----------------------------------------------------------------------------
def _mha_ln_kernel(q_ref, k_ref, v_ref,
                   wq_ref, bq_ref, wk_ref, bk_ref, wv_ref, bv_ref,
                   wo_ref, bo_ref, g_ref, b_ref,
                   o_ref, ctx_ref, *, nhead, head_dim):
    f32 = jnp.float32
    q = q_ref[...].astype(f32)
    k = k_ref[...].astype(f32)
    v = v_ref[...].astype(f32)

    scale = 1.0 / math.sqrt(head_dim)
    # Fold the attention scale into the Q projection (one (S,D) VPU mul instead of
    # one (S,S) mul per head).
    qp = (jnp.dot(q, wq_ref[...], preferred_element_type=f32) + bq_ref[...]) * scale
    kp = jnp.dot(k, wk_ref[...], preferred_element_type=f32) + bk_ref[...]
    vp = jnp.dot(v, wv_ref[...], preferred_element_type=f32) + bv_ref[...]

    # Per-head softmax attention; contexts go straight into a (S, D) VMEM scratch
    # so the out-projection is a single K = d_model matmul.
    for h in range(nhead):                       # static unroll, nhead is small
        lo = h * head_dim
        qh = qp[:, lo:lo + head_dim]
        kh = kp[:, lo:lo + head_dim]
        vh = vp[:, lo:lo + head_dim]
        # q @ k^T without an explicit transpose: contract the last dims.
        s = jax.lax.dot_general(qh, kh, (((1,), (1,)), ((), ())),
                                preferred_element_type=f32)
        # TODO(synk): additive attn_mask not wired in (reference forward uses None).
        s = s - jnp.max(s, axis=-1, keepdims=True)
        e = jnp.exp(s)
        p = e * pl.reciprocal(jnp.sum(e, axis=-1, keepdims=True), approx=True)
        ctx_ref[:, lo:lo + head_dim] = jnp.dot(p, vh, preferred_element_type=f32)

    attn = jnp.dot(ctx_ref[...], wo_ref[...], preferred_element_type=f32) + bo_ref[...]
    # Fused residual-add + LayerNorm: norm1(q + attn).
    o_ref[...] = _ln_math(q + attn, g_ref[...].astype(f32),
                          b_ref[...].astype(f32)).astype(o_ref.dtype)


def mha_add_norm(q, k, v, p, *, nhead):
    B, S, D = q.shape
    head_dim = D // nhead
    kernel = functools.partial(_mha_ln_kernel, nhead=nhead, head_dim=head_dim)
    qkv_spec = pl.BlockSpec((None, S, D), lambda b: (b, 0, 0))
    w_spec = pl.BlockSpec((D, D), _idx2_const)
    b_spec = pl.BlockSpec((1, D), _idx2_const)
    # TODO(synk): for large S, switch to flash-style q-row tiling (grid=(B, S//tq))
    # so the per-step working set fits v7x's 64 MiB VMEM.
    return pl.pallas_call(
        kernel,
        out_shape=jax.ShapeDtypeStruct((B, S, D), q.dtype),
        grid=(B,),
        in_specs=[qkv_spec, qkv_spec, qkv_spec,
                  w_spec, b_spec, w_spec, b_spec, w_spec, b_spec,
                  w_spec, b_spec, b_spec, b_spec],
        out_specs=pl.BlockSpec((None, S, D), lambda b: (b, 0, 0)),
        scratch_shapes=[pltpu.VMEM((S, D), jnp.float32)],
        compiler_params=pltpu.CompilerParams(
            dimension_semantics=("parallel",),
            vmem_limit_bytes=_VMEM_LIMIT),
    )(q, k, v, p["wq"], p["bq"], p["wk"], p["bk"], p["wv"], p["bv"],
      p["wo"], p["bo"], p["ln1_g"], p["ln1_b"])


# ----------------------------------------------------------------------------
# Row-tiled kernels over flattened (B*S, D) rows (no pad / slice copies)
# ----------------------------------------------------------------------------
def _ffn_ln_kernel(x_ref, w1_ref, b1_ref, w2_ref, b2_ref, g_ref, b_ref, o_ref):
    f32 = jnp.float32
    x = x_ref[...].astype(f32)
    h = jnp.maximum(
        jnp.dot(x, w1_ref[...], preferred_element_type=f32) + b1_ref[...], 0.0)
    # TODO(synk): dropout1/dropout2 are identity here (eval-mode semantics).
    y = jnp.dot(h, w2_ref[...], preferred_element_type=f32) + b2_ref[...]
    # Fused residual-add + LayerNorm: norm2(x + ffn(x)).
    o_ref[...] = _ln_math(x + y, g_ref[...].astype(f32),
                          b_ref[...].astype(f32)).astype(o_ref.dtype)


def _ln_kernel(x_ref, g_ref, b_ref, o_ref):
    f32 = jnp.float32
    o_ref[...] = _ln_math(x_ref[...].astype(f32), g_ref[...].astype(f32),
                          b_ref[...].astype(f32)).astype(o_ref.dtype)


def _row_call(kernel, x, aux_inputs, out_dtype):
    """Run `kernel` over row-tiled (M, D) input; aux inputs are small 2-D params."""
    M, D = x.shape
    # Tile <= 512 rows: amortizes per-step overhead while 2x-buffered inputs stay
    # well under the scoped-VMEM limit.  tile == M (full dim) when M <= 512, else
    # 512 (multiple of 8); the ragged last block is masked by Pallas and the
    # kernels are strictly row-wise, so garbage rows are never written back.
    tile = M if M <= 512 else 512
    row_spec = pl.BlockSpec((tile, D), lambda i: (i, 0))
    aux_specs = [pl.BlockSpec(a.shape, _idx2_const) for a in aux_inputs]
    return pl.pallas_call(
        kernel,
        out_shape=jax.ShapeDtypeStruct((M, D), out_dtype),
        grid=(pl.cdiv(M, tile),),
        in_specs=[row_spec] + aux_specs,
        out_specs=row_spec,
        compiler_params=pltpu.CompilerParams(
            dimension_semantics=("parallel",),
            vmem_limit_bytes=_VMEM_LIMIT),
    )(x, *aux_inputs)


def ffn_add_norm(x, p):
    B, S, D = x.shape
    out = _row_call(_ffn_ln_kernel, x.reshape(B * S, D),
                    [p["w1"], p["b1"], p["w2"], p["b2"], p["ln2_g"], p["ln2_b"]],
                    x.dtype)
    return out.reshape(B, S, D)


def layer_norm(x, gamma, beta):
    B, S, D = x.shape
    out = _row_call(_ln_kernel, x.reshape(B * S, D), [gamma, beta], x.dtype)
    return out.reshape(B, S, D)


# ----------------------------------------------------------------------------
# Encoder layer / encoder stack (mirrors the PyTorch forward exactly)
# ----------------------------------------------------------------------------
def encoder_layer(q, k, v, p, *, nhead):
    src = mha_add_norm(q, k, v, p, nhead=nhead)     # norm1(q + self_attn(q,k,v))
    return ffn_add_norm(src, p)                     # norm2(src + ffn(src))


def transformer_encoder(q, k, v, params, *, nhead):
    # Faithful to the PyTorch reference: every layer consumes the ORIGINAL
    # q, k, v (the loop overwrites `src` each iteration), then a final LayerNorm.
    src = q
    for p in params["layers"]:
        src = encoder_layer(q, k, v, p, nhead=nhead)
    return layer_norm(src, params["norm_g"], params["norm_b"])


# ----------------------------------------------------------------------------
# parameters (weights stored pre-transposed as (in, out); biases as (1, out))
# ----------------------------------------------------------------------------
def init_params(key, num_layers, d_model, nhead, dim_ff):
    def linear(k, fan_in, fan_out):
        kw, kb = jax.random.split(k)
        bound = 1.0 / math.sqrt(fan_in)
        w = jax.random.uniform(kw, (fan_in, fan_out), jnp.float32, -bound, bound)
        b = jax.random.uniform(kb, (1, fan_out), jnp.float32, -bound, bound)
        return w, b

    layers = []
    for lk in jax.random.split(key, num_layers):
        ks = jax.random.split(lk, 6)
        wq, bq = linear(ks[0], d_model, d_model)
        wk, bk = linear(ks[1], d_model, d_model)
        wv, bv = linear(ks[2], d_model, d_model)
        wo, bo = linear(ks[3], d_model, d_model)
        w1, b1 = linear(ks[4], d_model, dim_ff)
        w2, b2 = linear(ks[5], dim_ff, d_model)
        layers.append(dict(
            wq=wq, bq=bq, wk=wk, bk=bk, wv=wv, bv=bv, wo=wo, bo=bo,
            w1=w1, b1=b1, w2=w2, b2=b2,
            ln1_g=jnp.ones((1, d_model), jnp.float32),
            ln1_b=jnp.zeros((1, d_model), jnp.float32),
            ln2_g=jnp.ones((1, d_model), jnp.float32),
            ln2_b=jnp.zeros((1, d_model), jnp.float32)))
    return dict(layers=layers,
                norm_g=jnp.ones((1, d_model), jnp.float32),
                norm_b=jnp.zeros((1, d_model), jnp.float32))


# ----------------------------------------------------------------------------
# pure-JAX reference (mirrors the PyTorch module, eval mode)
# ----------------------------------------------------------------------------
def _ref_mha(q, k, v, p, nhead):
    B, S, D = q.shape
    hd = D // nhead
    qp = q @ p["wq"] + p["bq"]
    kp = k @ p["wk"] + p["bk"]
    vp = v @ p["wv"] + p["bv"]
    split = lambda x: x.reshape(B, S, nhead, hd).transpose(0, 2, 1, 3)
    qh, kh, vh = split(qp), split(kp), split(vp)
    s = jnp.einsum("bhqd,bhkd->bhqk", qh, kh) / math.sqrt(hd)
    a = jax.nn.softmax(s, axis=-1)
    o = jnp.einsum("bhqk,bhkd->bhqd", a, vh).transpose(0, 2, 1, 3).reshape(B, S, D)
    return o @ p["wo"] + p["bo"]


def _ref_ln(x, g, b, eps=1e-5):
    mu = x.mean(-1, keepdims=True)
    var = ((x - mu) ** 2).mean(-1, keepdims=True)
    return (x - mu) / jnp.sqrt(var + eps) * g + b


def _ref_layer(q, k, v, p, nhead):
    src2 = _ref_mha(q, k, v, p, nhead)
    src = _ref_ln(q + src2, p["ln1_g"], p["ln1_b"])
    src2 = jax.nn.relu(src @ p["w1"] + p["b1"]) @ p["w2"] + p["b2"]
    return _ref_ln(src + src2, p["ln2_g"], p["ln2_b"])


def _ref_encoder(q, k, v, params, nhead):
    src = q
    for p in params["layers"]:
        src = _ref_layer(q, k, v, p, nhead)
    return _ref_ln(src, params["norm_g"], params["norm_b"])


# ----------------------------------------------------------------------------
if __name__ == "__main__":
    num_layers, d_model, nhead, dim_ff = 2, 32, 4, 64
    B, S = 2, 16

    root = jax.random.PRNGKey(0)
    kq, kk, kv, kp = jax.random.split(root, 4)
    q = jax.random.normal(kq, (B, S, d_model), jnp.float32)
    k = jax.random.normal(kk, (B, S, d_model), jnp.float32)
    v = jax.random.normal(kv, (B, S, d_model), jnp.float32)
    params = init_params(kp, num_layers, d_model, nhead, dim_ff)

    out = transformer_encoder(q, k, v, params, nhead=nhead)
    out = jax.block_until_ready(out)

    ref = _ref_encoder(q, k, v, params, nhead)
    assert out.shape == (B, S, d_model)
    max_err = float(jnp.max(jnp.abs(out - ref)))
    assert jnp.allclose(out, ref, atol=2e-2, rtol=2e-2), f"mismatch vs ref: {max_err}"

    print("KERNEL_OK")
</pallas_src>

<mosaic_0001>
module attributes {stable_mosaic.version = 11 : i64} {
  func.func @_mha_ln_kernel(%arg0: i32, %arg1: memref<1x16x32xf32, #tpu.memory_space<vmem>>, %arg2: memref<1x16x32xf32, #tpu.memory_space<vmem>>, %arg3: memref<1x16x32xf32, #tpu.memory_space<vmem>>, %arg4: memref<32x32xf32, #tpu.memory_space<vmem>>, %arg5: memref<1x32xf32, #tpu.memory_space<vmem>>, %arg6: memref<32x32xf32, #tpu.memory_space<vmem>>, %arg7: memref<1x32xf32, #tpu.memory_space<vmem>>, %arg8: memref<32x32xf32, #tpu.memory_space<vmem>>, %arg9: memref<1x32xf32, #tpu.memory_space<vmem>>, %arg10: memref<32x32xf32, #tpu.memory_space<vmem>>, %arg11: memref<1x32xf32, #tpu.memory_space<vmem>>, %arg12: memref<1x32xf32, #tpu.memory_space<vmem>>, %arg13: memref<1x32xf32, #tpu.memory_space<vmem>>, %arg14: memref<1x16x32xf32, #tpu.memory_space<vmem>>, %arg15: memref<16x32xf32, #tpu.memory_space<vmem>>) attributes {dimension_semantics = [#tpu.dimension_semantics<parallel>], iteration_bounds = array<i64: 2>, scalar_prefetch = 0 : i64, scratch_operands = 1 : i64, tpu.core_type = #tpu.core_type<tc>, window_params = [{transform_indices = @transform_0, window_bounds = array<i64: 1, 16, 32>}, {transform_indices = @transform_1, window_bounds = array<i64: 1, 16, 32>}, {transform_indices = @transform_2, window_bounds = array<i64: 1, 16, 32>}, {pipeline_mode = #tpu.pipeline_mode<synchronous>, transform_indices = @transform_3, window_bounds = array<i64: 32, 32>}, {pipeline_mode = #tpu.pipeline_mode<synchronous>, transform_indices = @transform_4, window_bounds = array<i64: 1, 32>}, {pipeline_mode = #tpu.pipeline_mode<synchronous>, transform_indices = @transform_5, window_bounds = array<i64: 32, 32>}, {pipeline_mode = #tpu.pipeline_mode<synchronous>, transform_indices = @transform_6, window_bounds = array<i64: 1, 32>}, {pipeline_mode = #tpu.pipeline_mode<synchronous>, transform_indices = @transform_7, window_bounds = array<i64: 32, 32>}, {pipeline_mode = #tpu.pipeline_mode<synchronous>, transform_indices = @transform_8, window_bounds = array<i64: 1, 32>}, {pipeline_mode = #tpu.pipeline_mode<synchronous>, transform_indices = @transform_9, window_bounds = array<i64: 32, 32>}, {pipeline_mode = #tpu.pipeline_mode<synchronous>, transform_indices = @transform_10, window_bounds = array<i64: 1, 32>}, {pipeline_mode = #tpu.pipeline_mode<synchronous>, transform_indices = @transform_11, window_bounds = array<i64: 1, 32>}, {pipeline_mode = #tpu.pipeline_mode<synchronous>, transform_indices = @transform_12, window_bounds = array<i64: 1, 32>}, {transform_indices = @transform_13, window_bounds = array<i64: 1, 16, 32>}]} {
    %c0 = arith.constant 0 : index
    %c0_0 = arith.constant 0 : index
    %c0_1 = arith.constant 0 : index
    %0 = vector.load %arg1[%c0, %c0_0, %c0_1] : memref<1x16x32xf32, #tpu.memory_space<vmem>>, vector<1x16x32xf32>
    %1 = vector.shape_cast %0 : vector<1x16x32xf32> to vector<16x32xf32>
    %c0_2 = arith.constant 0 : index
    %c0_3 = arith.constant 0 : index
    %c0_4 = arith.constant 0 : index
    %2 = vector.load %arg2[%c0_2, %c0_3, %c0_4] : memref<1x16x32xf32, #tpu.memory_space<vmem>>, vector<1x16x32xf32>
    %3 = vector.shape_cast %2 : vector<1x16x32xf32> to vector<16x32xf32>
    %c0_5 = arith.constant 0 : index
    %c0_6 = arith.constant 0 : index
    %c0_7 = arith.constant 0 : index
    %4 = vector.load %arg3[%c0_5, %c0_6, %c0_7] : memref<1x16x32xf32, #tpu.memory_space<vmem>>, vector<1x16x32xf32>
    %5 = vector.shape_cast %4 : vector<1x16x32xf32> to vector<16x32xf32>
    %c0_8 = arith.constant 0 : index
    %c0_9 = arith.constant 0 : index
    %6 = vector.load %arg4[%c0_8, %c0_9] : memref<32x32xf32, #tpu.memory_space<vmem>>, vector<32x32xf32>
    %cst = arith.constant dense<0.000000e+00> : vector<16x32xf32>
    %7 = tpu.matmul %1, %6, %cst {dimension_numbers = #tpu.dot_dimension_numbers<[1], [0], [0], [1], [0, 0, 1, 1], [], []>} : vector<16x32xf32>, vector<32x32xf32>, vector<16x32xf32> -> vector<16x32xf32>
    %c0_10 = arith.constant 0 : index
    %c0_11 = arith.constant 0 : index
    %8 = vector.load %arg5[%c0_10, %c0_11] : memref<1x32xf32, #tpu.memory_space<vmem>>, vector<1x32xf32>
    %9 = vector.broadcast %8 : vector<1x32xf32> to vector<16x32xf32>
    %10 = arith.addf %7, %9 : vector<16x32xf32>
    %cst_12 = arith.constant 0.353553385 : f32
    %11 = vector.broadcast %cst_12 : f32 to vector<16x32xf32>
    %12 = arith.mulf %10, %11 : vector<16x32xf32>
    %c0_13 = arith.constant 0 : index
    %c0_14 = arith.constant 0 : index
    %13 = vector.load %arg6[%c0_13, %c0_14] : memref<32x32xf32, #tpu.memory_space<vmem>>, vector<32x32xf32>
    %cst_15 = arith.constant dense<0.000000e+00> : vector<16x32xf32>
    %14 = tpu.matmul %3, %13, %cst_15 {dimension_numbers = #tpu.dot_dimension_numbers<[1], [0], [0], [1], [0, 0, 1, 1], [], []>} : vector<16x32xf32>, vector<32x32xf32>, vector<16x32xf32> -> vector<16x32xf32>
    %c0_16 = arith.constant 0 : index
    %c0_17 = arith.constant 0 : index
    %15 = vector.load %arg7[%c0_16, %c0_17] : memref<1x32xf32, #tpu.memory_space<vmem>>, vector<1x32xf32>
    %16 = vector.broadcast %15 : vector<1x32xf32> to vector<16x32xf32>
    %17 = arith.addf %14, %16 : vector<16x32xf32>
    %c0_18 = arith.constant 0 : index
    %c0_19 = arith.constant 0 : index
    %18 = vector.load %arg8[%c0_18, %c0_19] : memref<32x32xf32, #tpu.memory_space<vmem>>, vector<32x32xf32>
    %cst_20 = arith.constant dense<0.000000e+00> : vector<16x32xf32>
    %19 = tpu.matmul %5, %18, %cst_20 {dimension_numbers = #tpu.dot_dimension_numbers<[1], [0], [0], [1], [0, 0, 1, 1], [], []>} : vector<16x32xf32>, vector<32x32xf32>, vector<16x32xf32> -> vector<16x32xf32>
    %c0_21 = arith.constant 0 : index
    %c0_22 = arith.constant 0 : index
    %20 = vector.load %arg9[%c0_21, %c0_22] : memref<1x32xf32, #tpu.memory_space<vmem>>, vector<1x32xf32>
    %21 = vector.broadcast %20 : vector<1x32xf32> to vector<16x32xf32>
    %22 = arith.addf %19, %21 : vector<16x32xf32>
    %23 = vector.extract_strided_slice %12 {offsets = [0, 0], sizes = [16, 8], strides = [1, 1]} : vector<16x32xf32> to vector<16x8xf32>
    %24 = vector.extract_strided_slice %17 {offsets = [0, 0], sizes = [16, 8], strides = [1, 1]} : vector<16x32xf32> to vector<16x8xf32>
    %25 = vector.extract_strided_slice %22 {offsets = [0, 0], sizes = [16, 8], strides = [1, 1]} : vector<16x32xf32> to vector<16x8xf32>
    %cst_23 = arith.constant dense<0.000000e+00> : vector<16x16xf32>
    %26 = tpu.matmul %23, %24, %cst_23 {dimension_numbers = #tpu.dot_dimension_numbers<[1], [1], [0], [0], [0, 0, 1, 0], [], []>} : vector<16x8xf32>, vector<16x8xf32>, vector<16x16xf32> -> vector<16x16xf32>
    %cst_24 = arith.constant dense<0xFF800000> : vector<16xf32>
    %27 = vector.multi_reduction <maximumf>, %26, %cst_24 [1] : vector<16x16xf32> to vector<16xf32>
    %28 = vector.shape_cast %27 : vector<16xf32> to vector<16x1xf32>
    %29 = vector.broadcast %28 : vector<16x1xf32> to vector<16x16xf32>
    %30 = arith.subf %26, %29 : vector<16x16xf32>
    %31 = math.exp %30 : vector<16x16xf32>
    %cst_25 = arith.constant dense<0.000000e+00> : vector<16xf32>
    %32 = vector.multi_reduction <add>, %31, %cst_25 [1] : vector<16x16xf32> to vector<16xf32>
    %33 = vector.shape_cast %32 : vector<16xf32> to vector<16x1xf32>
    %34 = tpu.reciprocal %33 {approx = true} : vector<16x1xf32> -> vector<16x1xf32>
    %35 = vector.broadcast %34 : vector<16x1xf32> to vector<16x16xf32>
    %36 = arith.mulf %31, %35 : vector<16x16xf32>
    %cst_26 = arith.constant dense<0.000000e+00> : vector<16x8xf32>
    %37 = tpu.matmul %36, %25, %cst_26 {dimension_numbers = #tpu.dot_dimension_numbers<[1], [0], [0], [1], [0, 0, 1, 1], [], []>} : vector<16x16xf32>, vector<16x8xf32>, vector<16x8xf32> -> vector<16x8xf32>
    %c0_27 = arith.constant 0 : index
    %c0_28 = arith.constant 0 : index
    %38 = vector.load %arg15[%c0_27, %c0_28] : memref<16x32xf32, #tpu.memory_space<vmem>>, vector<16x8xf32>
    tpu.vector_store %arg15[%c0_27, %c0_28], %37 {strides = array<i32>} : memref<16x32xf32, #tpu.memory_space<vmem>>, vector<16x8xf32>,
    %39 = vector.extract_strided_slice %12 {offsets = [0, 8], sizes = [16, 8], strides = [1, 1]} : vector<16x32xf32> to vector<16x8xf32>
    %40 = vector.extract_strided_slice %17 {offsets = [0, 8], sizes = [16, 8], strides = [1, 1]} : vector<16x32xf32> to vector<16x8xf32>
    %41 = vector.extract_strided_slice %22 {offsets = [0, 8], sizes = [16, 8], strides = [1, 1]} : vector<16x32xf32> to vector<16x8xf32>
    %cst_29 = arith.constant dense<0.000000e+00> : vector<16x16xf32>
    %42 = tpu.matmul %39, %40, %cst_29 {dimension_numbers = #tpu.dot_dimension_numbers<[1], [1], [0], [0], [0, 0, 1, 0], [], []>} : vector<16x8xf32>, vector<16x8xf32>, vector<16x16xf32> -> vector<16x16xf32>
    %cst_30 = arith.constant dense<0xFF800000> : vector<16xf32>
    %43 = vector.multi_reduction <maximumf>, %42, %cst_30 [1] : vector<16x16xf32> to vector<16xf32>
    %44 = vector.shape_cast %43 : vector<16xf32> to vector<16x1xf32>
    %45 = vector.broadcast %44 : vector<16x1xf32> to vector<16x16xf32>
    %46 = arith.subf %42, %45 : vector<16x16xf32>
    %47 = math.exp %46 : vector<16x16xf32>
    %cst_31 = arith.constant dense<0.000000e+00> : vector<16xf32>
    %48 = vector.multi_reduction <add>, %47, %cst_31 [1] : vector<16x16xf32> to vector<16xf32>
    %49 = vector.shape_cast %48 : vector<16xf32> to vector<16x1xf32>
    %50 = tpu.reciprocal %49 {approx = true} : vector<16x1xf32> -> vector<16x1xf32>
    %51 = vector.broadcast %50 : vector<16x1xf32> to vector<16x16xf32>
    %52 = arith.mulf %47, %51 : vector<16x16xf32>
    %cst_32 = arith.constant dense<0.000000e+00> : vector<16x8xf32>
    %53 = tpu.matmul %52, %41, %cst_32 {dimension_numbers = #tpu.dot_dimension_numbers<[1], [0], [0], [1], [0, 0, 1, 1], [], []>} : vector<16x16xf32>, vector<16x8xf32>, vector<16x8xf32> -> vector<16x8xf32>
    %c0_33 = arith.constant 0 : index
    %c8 = arith.constant 8 : index
    %54 = vector.load %arg15[%c0_33, %c8] : memref<16x32xf32, #tpu.memory_space<vmem>>, vector<16x8xf32>
    tpu.vector_store %arg15[%c0_33, %c8], %53 {strides = array<i32>} : memref<16x32xf32, #tpu.memory_space<vmem>>, vector<16x8xf32>,
    %55 = vector.extract_strided_slice %12 {offsets = [0, 16], sizes = [16, 8], strides = [1, 1]} : vector<16x32xf32> to vector<16x8xf32>
    %56 = vector.extract_strided_slice %17 {offsets = [0, 16], sizes = [16, 8], strides = [1, 1]} : vector<16x32xf32> to vector<16x8xf32>
    %57 = vector.extract_strided_slice %22 {offsets = [0, 16], sizes = [16, 8], strides = [1, 1]} : vector<16x32xf32> to vector<16x8xf32>
    %cst_34 = arith.constant dense<0.000000e+00> : vector<16x16xf32>
    %58 = tpu.matmul %55, %56, %cst_34 {dimension_numbers = #tpu.dot_dimension_numbers<[1], [1], [0], [0], [0, 0, 1, 0], [], []>} : vector<16x8xf32>, vector<16x8xf32>, vector<16x16xf32> -> vector<16x16xf32>
    %cst_35 = arith.constant dense<0xFF800000> : vector<16xf32>
    %59 = vector.multi_reduction <maximumf>, %58, %cst_35 [1] : vector<16x16xf32> to vector<16xf32>
    %60 = vector.shape_cast %59 : vector<16xf32> to vector<16x1xf32>
    %61 = vector.broadcast %60 : vector<16x1xf32> to vector<16x16xf32>
    %62 = arith.subf %58, %61 : vector<16x16xf32>
    %63 = math.exp %62 : vector<16x16xf32>
    %cst_36 = arith.constant dense<0.000000e+00> : vector<16xf32>
    %64 = vector.multi_reduction <add>, %63, %cst_36 [1] : vector<16x16xf32> to vector<16xf32>
    %65 = vector.shape_cast %64 : vector<16xf32> to vector<16x1xf32>
    %66 = tpu.reciprocal %65 {approx = true} : vector<16x1xf32> -> vector<16x1xf32>
    %67 = vector.broadcast %66 : vector<16x1xf32> to vector<16x16xf32>
    %68 = arith.mulf %63, %67 : vector<16x16xf32>
    %cst_37 = arith.constant dense<0.000000e+00> : vector<16x8xf32>
    %69 = tpu.matmul %68, %57, %cst_37 {dimension_numbers = #tpu.dot_dimension_numbers<[1], [0], [0], [1], [0, 0, 1, 1], [], []>} : vector<16x16xf32>, vector<16x8xf32>, vector<16x8xf32> -> vector<16x8xf32>
    %c0_38 = arith.constant 0 : index
    %c16 = arith.constant 16 : index
    %70 = vector.load %arg15[%c0_38, %c16] : memref<16x32xf32, #tpu.memory_space<vmem>>, vector<16x8xf32>
    tpu.vector_store %arg15[%c0_38, %c16], %69 {strides = array<i32>} : memref<16x32xf32, #tpu.memory_space<vmem>>, vector<16x8xf32>,
    %71 = vector.extract_strided_slice %12 {offsets = [0, 24], sizes = [16, 8], strides = [1, 1]} : vector<16x32xf32> to vector<16x8xf32>
    %72 = vector.extract_strided_slice %17 {offsets = [0, 24], sizes = [16, 8], strides = [1, 1]} : vector<16x32xf32> to vector<16x8xf32>
    %73 = vector.extract_strided_slice %22 {offsets = [0, 24], sizes = [16, 8], strides = [1, 1]} : vector<16x32xf32> to vector<16x8xf32>
    %cst_39 = arith.constant dense<0.000000e+00> : vector<16x16xf32>
    %74 = tpu.matmul %71, %72, %cst_39 {dimension_numbers = #tpu.dot_dimension_numbers<[1], [1], [0], [0], [0, 0, 1, 0], [], []>} : vector<16x8xf32>, vector<16x8xf32>, vector<16x16xf32> -> vector<16x16xf32>
    %cst_40 = arith.constant dense<0xFF800000> : vector<16xf32>
    %75 = vector.multi_reduction <maximumf>, %74, %cst_40 [1] : vector<16x16xf32> to vector<16xf32>
    %76 = vector.shape_cast %75 : vector<16xf32> to vector<16x1xf32>
    %77 = vector.broadcast %76 : vector<16x1xf32> to vector<16x16xf32>
    %78 = arith.subf %74, %77 : vector<16x16xf32>
    %79 = math.exp %78 : vector<16x16xf32>
    %cst_41 = arith.constant dense<0.000000e+00> : vector<16xf32>
    %80 = vector.multi_reduction <add>, %79, %cst_41 [1] : vector<16x16xf32> to vector<16xf32>
    %81 = vector.shape_cast %80 : vector<16xf32> to vector<16x1xf32>
    %82 = tpu.reciprocal %81 {approx = true} : vector<16x1xf32> -> vector<16x1xf32>
    %83 = vector.broadcast %82 : vector<16x1xf32> to vector<16x16xf32>
    %84 = arith.mulf %79, %83 : vector<16x16xf32>
    %cst_42 = arith.constant dense<0.000000e+00> : vector<16x8xf32>
    %85 = tpu.matmul %84, %73, %cst_42 {dimension_numbers = #tpu.dot_dimension_numbers<[1], [0], [0], [1], [0, 0, 1, 1], [], []>} : vector<16x16xf32>, vector<16x8xf32>, vector<16x8xf32> -> vector<16x8xf32>
    %c0_43 = arith.constant 0 : index
    %c24 = arith.constant 24 : index
    %86 = vector.load %arg15[%c0_43, %c24] : memref<16x32xf32, #tpu.memory_space<vmem>>, vector<16x8xf32>
    tpu.vector_store %arg15[%c0_43, %c24], %85 {strides = array<i32>} : memref<16x32xf32, #tpu.memory_space<vmem>>, vector<16x8xf32>,
    %c0_44 = arith.constant 0 : index
    %c0_45 = arith.constant 0 : index
    %87 = vector.load %arg15[%c0_44, %c0_45] : memref<16x32xf32, #tpu.memory_space<vmem>>, vector<16x32xf32>
    %c0_46 = arith.constant 0 : index
    %c0_47 = arith.constant 0 : index
    %88 = vector.load %arg10[%c0_46, %c0_47] : memref<32x32xf32, #tpu.memory_space<vmem>>, vector<32x32xf32>
    %cst_48 = arith.constant dense<0.000000e+00> : vector<16x32xf32>
    %89 = tpu.matmul %87, %88, %cst_48 {dimension_numbers = #tpu.dot_dimension_numbers<[1], [0], [0], [1], [0, 0, 1, 1], [], []>} : vector<16x32xf32>, vector<32x32xf32>, vector<16x32xf32> -> vector<16x32xf32>
    %c0_49 = arith.constant 0 : index
    %c0_50 = arith.constant 0 : index
    %90 = vector.load %arg11[%c0_49, %c0_50] : memref<1x32xf32, #tpu.memory_space<vmem>>, vector<1x32xf32>
    %91 = vector.broadcast %90 : vector<1x32xf32> to vector<16x32xf32>
    %92 = arith.addf %89, %91 : vector<16x32xf32>
    %93 = arith.addf %1, %92 : vector<16x32xf32>
    %c0_51 = arith.constant 0 : index
    %c0_52 = arith.constant 0 : index
    %94 = vector.load %arg12[%c0_51, %c0_52] : memref<1x32xf32, #tpu.memory_space<vmem>>, vector<1x32xf32>
    %c0_53 = arith.constant 0 : index
    %c0_54 = arith.constant 0 : index
    %95 = vector.load %arg13[%c0_53, %c0_54] : memref<1x32xf32, #tpu.memory_space<vmem>>, vector<1x32xf32>
    %cst_55 = arith.constant dense<0.000000e+00> : vector<16xf32>
    %96 = vector.multi_reduction <add>, %93, %cst_55 [1] : vector<16x32xf32> to vector<16xf32>
    %97 = vector.shape_cast %96 : vector<16xf32> to vector<16x1xf32>
    %cst_56 = arith.constant 3.200000e+01 : f32
    %98 = vector.broadcast %cst_56 : f32 to vector<16x1xf32>
    %99 = arith.divf %97, %98 : vector<16x1xf32>
    %100 = vector.broadcast %99 : vector<16x1xf32> to vector<16x32xf32>
    %101 = arith.subf %93, %100 : vector<16x32xf32>
    %102 = arith.mulf %101, %101 : vector<16x32xf32>
    %cst_57 = arith.constant dense<0.000000e+00> : vector<16xf32>
    %103 = vector.multi_reduction <add>, %102, %cst_57 [1] : vector<16x32xf32> to vector<16xf32>
    %104 = vector.shape_cast %103 : vector<16xf32> to vector<16x1xf32>
    %cst_58 = arith.constant 3.200000e+01 : f32
    %105 = vector.broadcast %cst_58 : f32 to vector<16x1xf32>
    %106 = arith.divf %104, %105 : vector<16x1xf32>
    %cst_59 = arith.constant 9.99999974E-6 : f32
    %107 = vector.broadcast %cst_59 : f32 to vector<16x1xf32>
    %108 = arith.addf %106, %107 : vector<16x1xf32>
    %109 = math.rsqrt %108 : vector<16x1xf32>
    %110 = vector.broadcast %109 : vector<16x1xf32> to vector<16x32xf32>
    %111 = arith.mulf %101, %110 : vector<16x32xf32>
    %112 = vector.broadcast %94 : vector<1x32xf32> to vector<16x32xf32>
    %113 = arith.mulf %111, %112 : vector<16x32xf32>
    %114 = vector.broadcast %95 : vector<1x32xf32> to vector<16x32xf32>
    %115 = arith.addf %113, %114 : vector<16x32xf32>
    %c0_60 = arith.constant 0 : index
    %c0_61 = arith.constant 0 : index
    %c0_62 = arith.constant 0 : index
    %116 = vector.load %arg14[%c0_60, %c0_61, %c0_62] : memref<1x16x32xf32, #tpu.memory_space<vmem>>, vector<1x16x32xf32>
    %117 = vector.shape_cast %116 : vector<1x16x32xf32> to vector<16x32xf32>
    %118 = vector.shape_cast %115 : vector<16x32xf32> to vector<1x16x32xf32>
    tpu.vector_store %arg14[%c0_60, %c0_61, %c0_62], %118 {strides = array<i32>} : memref<1x16x32xf32, #tpu.memory_space<vmem>>, vector<1x16x32xf32>,
    return
  }
  func.func @transform_0(%arg0: i32) -> (i32, i32, i32) {
    %c0_i32 = arith.constant 0 : i32
    %c0_i32_0 = arith.constant 0 : i32
    %c0_i32_1 = arith.constant 0 : i32
    return %arg0, %c0_i32, %c0_i32_0 : i32, i32, i32
  }
  func.func @transform_1(%arg0: i32) -> (i32, i32, i32) {
    %c0_i32 = arith.constant 0 : i32
    %c0_i32_0 = arith.constant 0 : i32
    %c0_i32_1 = arith.constant 0 : i32
    return %arg0, %c0_i32, %c0_i32_0 : i32, i32, i32
  }
  func.func @transform_2(%arg0: i32) -> (i32, i32, i32) {
    %c0_i32 = arith.constant 0 : i32
    %c0_i32_0 = arith.constant 0 : i32
    %c0_i32_1 = arith.constant 0 : i32
    return %arg0, %c0_i32, %c0_i32_0 : i32, i32, i32
  }
  func.func @transform_3(%arg0: i32) -> (i32, i32) {
    %c0_i32 = arith.constant 0 : i32
    %c0_i32_0 = arith.constant 0 : i32
    %c0_i32_1 = arith.constant 0 : i32
    return %c0_i32, %c0_i32_0 : i32, i32
  }
  func.func @transform_4(%arg0: i32) -> (i32, i32) {
    %c0_i32 = arith.constant 0 : i32
    %c0_i32_0 = arith.constant 0 : i32
    %c0_i32_1 = arith.constant 0 : i32
    return %c0_i32, %c0_i32_0 : i32, i32
  }
  func.func @transform_5(%arg0: i32) -> (i32, i32) {
    %c0_i32 = arith.constant 0 : i32
    %c0_i32_0 = arith.constant 0 : i32
    %c0_i32_1 = arith.constant 0 : i32
    return %c0_i32, %c0_i32_0 : i32, i32
  }
  func.func @transform_6(%arg0: i32) -> (i32, i32) {
    %c0_i32 = arith.constant 0 : i32
    %c0_i32_0 = arith.constant 0 : i32
    %c0_i32_1 = arith.constant 0 : i32
    return %c0_i32, %c0_i32_0 : i32, i32
  }
  func.func @transform_7(%arg0: i32) -> (i32, i32) {
    %c0_i32 = arith.constant 0 : i32
    %c0_i32_0 = arith.constant 0 : i32
    %c0_i32_1 = arith.constant 0 : i32
    return %c0_i32, %c0_i32_0 : i32, i32
  }
  func.func @transform_8(%arg0: i32) -> (i32, i32) {
    %c0_i32 = arith.constant 0 : i32
    %c0_i32_0 = arith.constant 0 : i32
    %c0_i32_1 = arith.constant 0 : i32
    return %c0_i32, %c0_i32_0 : i32, i32
  }
  func.func @transform_9(%arg0: i32) -> (i32, i32) {
    %c0_i32 = arith.constant 0 : i32
    %c0_i32_0 = arith.constant 0 : i32
    %c0_i32_1 = arith.constant 0 : i32
    return %c0_i32, %c0_i32_0 : i32, i32
  }
  func.func @transform_10(%arg0: i32) -> (i32, i32) {
    %c0_i32 = arith.constant 0 : i32
    %c0_i32_0 = arith.constant 0 : i32
    %c0_i32_1 = arith.constant 0 : i32
    return %c0_i32, %c0_i32_0 : i32, i32
  }
  func.func @transform_11(%arg0: i32) -> (i32, i32) {
    %c0_i32 = arith.constant 0 : i32
    %c0_i32_0 = arith.constant 0 : i32
    %c0_i32_1 = arith.constant 0 : i32
    return %c0_i32, %c0_i32_0 : i32, i32
  }
  func.func @transform_12(%arg0: i32) -> (i32, i32) {
    %c0_i32 = arith.constant 0 : i32
    %c0_i32_0 = arith.constant 0 : i32
    %c0_i32_1 = arith.constant 0 : i32
    return %c0_i32, %c0_i32_0 : i32, i32
  }
  func.func @transform_13(%arg0: i32) -> (i32, i32, i32) {
    %c0_i32 = arith.constant 0 : i32
    %c0_i32_0 = arith.constant 0 : i32
    %c0_i32_1 = arith.constant 0 : i32
    return %arg0, %c0_i32, %c0_i32_0 : i32, i32, i32
  }
}

</mosaic_0001>

<bundles_post_ra>
// kernel: tpu_custom_call.1
= control target key start
LH: loop header
LB: loop body
LE: loop exit
PB: predicated region body
PF: predicated region fallthrough
CT: control target
= control target key end

     0   :  { %s2386_s0 = inlined_call_operand.hbm [shape: f32[2,16,32], index: 0, kind: input, shape index: {}]   ;;  %s2387_s1 = inlined_call_operand.hbm [shape: f32[2,16,32], index: 1, kind: input, shape index: {}]   ;;  %s2388_s2 = inlined_call_operand.hbm [shape: f32[2,16,32], index: 2, kind: input, shape index: {}]   ;;  %s2389_s3 = inlined_call_operand.hbm [shape: f32[32,32], index: 3, kind: input, shape index: {}]   ;;  %s2390_s4 = inlined_call_operand.vmem [shape: f32[1,32], index: 4, kind: input, shape index: {}]   ;;  %s2391_s5 = inlined_call_operand.hbm [shape: f32[32,32], index: 5, kind: input, shape index: {}]   ;;  %s2392_s6 = inlined_call_operand.vmem [shape: f32[1,32], index: 6, kind: input, shape index: {}]   ;;  %s2393_s7 = inlined_call_operand.hbm [shape: f32[32,32], index: 7, kind: input, shape index: {}]   ;;  %s2394_s8 = inlined_call_operand.vmem [shape: f32[1,32], index: 8, kind: input, shape index: {}]   ;;  %s2395_s9 = inlined_call_operand.hbm [shape: f32[32,32], index: 9, kind: input, shape index: {}]   ;;  %s2396_s10 = inlined_call_operand.vmem [shape: f32[1,32], index: 10, kind: input, shape index: {}]   ;;  %s2397_s11 = inlined_call_operand.vmem [shape: f32[1,32], index: 11, kind: input, shape index: {}]   ;;  %s2398_s12 = inlined_call_operand.vmem [shape: f32[1,32], index: 12, kind: input, shape index: {}]   ;;  %s2399_s13 = inlined_call_operand.hbm [shape: f32[2,16,32], index: 13, kind: output, shape index: {}]  }
   0x1   :  { %2414 = sst [smem:[#allocation27_spill]] %s2387_s1 }
   0x2   :  { %2415 = sst [smem:[#allocation28_spill]] %s2389_s3 }
   0x3   :  { %2416 = sst [smem:[#allocation29_spill]] %s2391_s5 }
   0x4   :  { %2417 = sst [smem:[#allocation30_spill]] %s2393_s7 }
   0x5   :  { %2418 = sst [smem:[#allocation31_spill]] %s2395_s9 }
   0x6   :  { %2419 = sst [smem:[#allocation32_spill]] %s2398_s12 }
   0x7   :  { %2420 = sst [smem:[#allocation33_spill]] %s2399_s13 }
   0x8   :  { %18 = vsyncpa [#allocation4], 0 }
   0x9   :  { %20 = vsyncpa [#allocation4 + $0x1], 0 }
   0xa   :  { %21 = vsyncpa [#allocation7], 0 }
   0xb   :  { %23 = vsyncpa [#allocation7 + $0x1], 0 }
   0xc   :  { %24 = vsyncpa [#allocation10], 0 }
   0xd   :  { %25 = vsyncpa [#allocation13], 0 }
   0xe   :  { %26 = vsyncpa [#allocation5], 0 }
   0xf   :  { %28 = vsyncpa [#allocation5 + $0x1], 0  ;;  %s2023_s25 = smov 0   ;;  %s2025_s26 = smov 0  }
  0x10   :  { %s2027_s27 = smov 0   ;;  %s2029_s28 = smov 0  }
  0x11 LB: > { %2421 = sst [smem:[#allocation21_spill]] %s1925_s25  ;;  %s2044_s29 = sadd.s32 4294967295, %s1937_s28   ;;  %s1937_s28 = sphi %s2029_s28, %s2452_s28   ;;  %s1933_s27 = sphi %s2027_s27, %s2456_s27   ;;  %s1929_s26 = sphi %s2025_s26, %s2455_s26   ;;  %s1925_s25 = sphi %s2023_s25, %s2454_s25  }
  0x12   : > { %2422 = sst [smem:[#allocation22_spill]] %s1937_s28  ;;  %s1417_s30 = sadd.s32 4294967294, %s1937_s28  }
  0x13   : > { %p54_p0 = scmp.ne.s32.totalorder %s1929_s26, %s1925_s25  ;;  %p2413_p1 = scmp.eq.s32.totalorder %s2044_s29, 0 }
  0x14   : > { %p340_p2 = scmp.eq.s32.totalorder %s2044_s29, 1  ;;  %p346_p3 = scmp.eq.s32.totalorder %s1417_s30, 1 }
  0x15   : > { %p2053_p4 = por %p2413_p1, %p54_p0  ;;  %p1418_p5 = scmp.ge.s32.totalorder %s1937_s28, 1 }
  0x16   : > { %p2058_p6 = por %p346_p3, %p54_p0  ;;  %p353_p7 = scmp.lt.s32.totalorder %s1937_s28, 3 }
  0x17   : > { %s2426_s3 = sld [smem:[#allocation28_spill]]  ;;  %s1939_s20 = smov [#allocation9]  }
  0x18   : > { %s2424_s15 = scalar_select %p2058_p6, 1, 0 }
  0x19   : > { %p2066_p8 = pnand %p1418_p5, %p353_p7  ;;  %s366_s21 = sshll.u32 %s1939_s20, 4  ;;  %s367_s21 = int_to_ptr.vmem [resolvable:$true] %s366_s21 }
  0x1a   : > { %2425 = sst [smem:[#allocation23_spill]] %s2424_s15  ;;  %s2400_s16 = smov 128  }
  0x1b   : > { %p1507_p9 = pneg %p2066_p8  ;;  %s2429_s7 = sld [smem:[#allocation30_spill]] }
  0x1c   : > { %s2402_s17 = smov 8   ;;  %s1942_s20 = smov [#allocation12]  }
  0x1d   : > { %s364_s18 = sshll.u32 %s2426_s3, 4  ;;  %p2074_p10 = pnand %p1507_p9, %p2413_p1  ;;  %s365_s18 = int_to_ptr.hbm [resolvable:$true] %s364_s18 }
  0x1e   : > { %s400_s3 = sshll.u32 %s1942_s20, 4  ;;  %s2093_s23 = sadd.s32 1, %s1937_s28   ;;  %s401_s3 = int_to_ptr.vmem [resolvable:$true] %s400_s3 }
  0x1f   : > { %1510 = dma.hbm_to_vmem [thread:$0]  (!%p2074_p10), %s365_s18, 512, %s367_s21, [#allocation10], %s2400_s16, %s2400_s16, %s2402_s17  }
  0x20   : > { %2430 = sst [smem:[#allocation24_spill]] %s2093_s23  ;;  %s41_s24 = sadd.s32 1, %s1933_s27 }
  0x21   : > { %s398_s30 = sshll.u32 %s2429_s7, 4  ;;  %s38_s7 = ssub.s32 %s1937_s28, %s2093_s23  ;;  %s399_s30 = int_to_ptr.hbm [resolvable:$true] %s398_s30 }
  0x22   : > { %1516 = dma.hbm_to_vmem [thread:$0]  (!%p2074_p10), %s399_s30, 512, %s401_s3, [#allocation13], %s2400_s16, %s2400_s16, %s2402_s17  }
  0x23   : > { %p48_p12 = scmp.ne.s32.totalorder %s1933_s27, %s1929_s26  ;;  %p39_p13 = scmp.eq.s32.totalorder %s38_s7, 0 }
  0x24   : > { %p49_p0 = scmp.eq.s32.totalorder %s1937_s28, 0  ;;  %p1538_p5 = scmp.lt.s32.totalorder %s1937_s28, 2 }
  0x25   : > { %p2103_p3 = por %p340_p2, %p48_p12  ;;  %s2408_s20 = sand.u32 1, %s1933_s27  }
  0x26   : > { %s2109_s21 = scalar_select %p39_p13, %s1933_s27, %s41_s24  }
  0x27   : > { %s2431_s18 = scalar_select %p2103_p3, 1, 0 }
  0x28   : > { %2433 = sst [smem:[#allocation26_spill]] %s2109_s21  ;;  %p50_p7 = por %p49_p0, %p48_p12 }
  0x29   : > { %2432 = sst [smem:[#allocation25_spill]] %s2431_s18  ;;  %s2114_s3 = sshll.u32 %s2408_s20, 4 }
  0x2a   : > { %s2117_s30 = sshll.u32 %s1937_s28, 4  ;;  %p2119_p9 = pnand %p1538_p5, %p50_p7 }
  0x2b   : > { %s462_s16 = sand.u32 1, %s1937_s28   ;;  %s2435_s1 = sld [smem:[#allocation27_spill]] }
  0x2c   : > { %s466_s15 = scalar_lea.vmem [#allocation6], %s2114_s3  ;;  %s2129_s20 = scalar_lea.sflag [#allocation7], %s462_s16 }
  0x2d   : > { %s474_s25 = sshll.u32 %s466_s15, 4  ;;  %p1713_p12 = pneg %p2119_p9  ;;  %s475_s25 = int_to_ptr.vmem [resolvable:$true] %s474_s25 }
  0x31   : > { %s471_s24 = scalar_lea.hbm %s2435_s1, %s2117_s30  ;;  %s1716_s23 = scalar_lea.hbm %s2435_s1, 32 }
  0x32   : > { %s472_s21 = sshll.u32 %s471_s24, 4  ;;  %s473_s21 = int_to_ptr.hbm [resolvable:$true] %s472_s21 }
  0x33   : > { %s1709_s18 = sshra.s32 %s473_s21, 4  ;;  %s1710_s18 = int_to_ptr.hbm [resolvable:$true] %s1709_s18 }
  0x34   : > { %s1711_s13 = scalar_lea.hbm %s1710_s18, 16  ;;  %p1717_p5 = scmp.lt.s32.totalorder %s1710_s18, %s2435_s1 }
  0x35   : > { %p1712_p2 = scmp.ne.s32.totalorder %s1710_s18, %s1711_s13  ;;  %p1718_p7 = scmp.lt.s32.totalorder %s1716_s23, %s1711_s13 }
  0x37   : > { %p1714_p13 = pnand %p1713_p12, %p1712_p2  ;;  %p1719_p11 = por %p1718_p7, %p1717_p5 }
  0x39   : > { %p1715_p0 = pneg %p1714_p13 }
  0x3b   : > { %p1720_p1 = pnand %p1719_p11, %p1715_p0 }
  0x3d   : > { %1723 = shalt.err (!%p1720_p1)
}
  0x3e   : > { %s2436_s16 = smov 8   ;;  %s2437_s12 = smov 128  }
  0x3f   : > { %1526 = dma.hbm_to_vmem [thread:$0]  (!%p2119_p9), %s473_s21, 256, %s475_s25, %s2129_s20, %s2437_s12, %s2437_s12, %s2436_s16  }
  0x40   : > { %s2438_s5 = sld [smem:[#allocation29_spill]]  ;;  %s1943_s13 = smov [#allocation11]  }
  0x41   : > { %s383_s18 = sshll.u32 %s1943_s13, 4  ;;  %s2439_s9 = sld [smem:[#allocation31_spill]]  ;;  %s384_s18 = int_to_ptr.vmem [resolvable:$true] %s383_s18 }
  0x42   : > { %s1944_s25 = smov [#allocation14]   ;;  %s449_s13 = scalar_lea.hbm %s2386_s0, %s2117_s30 }
  0x43   : > { %s417_s21 = sshll.u32 %s1944_s25, 4  ;;  %s444_s23 = scalar_lea.vmem [#allocation3], %s2114_s3  ;;  %s418_s21 = int_to_ptr.vmem [resolvable:$true] %s417_s21 }
  0x44   : > { %s452_s15 = sshll.u32 %s444_s23, 4  ;;  %s453_s15 = int_to_ptr.vmem [resolvable:$true] %s452_s15 }
  0x46   : > { %s381_s24 = sshll.u32 %s2438_s5, 4  ;;  %s450_s5 = sshll.u32 %s449_s13, 4  ;;  %s382_s24 = int_to_ptr.hbm [resolvable:$true] %s381_s24  ;;  %s451_s5 = int_to_ptr.hbm [resolvable:$true] %s450_s5 }
  0x47   : > { %s415_s1 = sshll.u32 %s2439_s9, 4  ;;  %s1799_s9 = sshra.s32 %s451_s5, 4  ;;  %s416_s1 = int_to_ptr.hbm [resolvable:$true] %s415_s1  ;;  %s1800_s9 = int_to_ptr.hbm [resolvable:$true] %s1799_s9 }
  0x48   : > { %1513 = dma.hbm_to_vmem [thread:$0]  (!%p2074_p10), %s382_s24, 512, %s384_s18, [#allocation10], %s2437_s12, %s2437_s12, %s2436_s16  }
  0x49   : > { %1519 = dma.hbm_to_vmem [thread:$0]  (!%p2074_p10), %s416_s1, 512, %s418_s21, [#allocation13], %s2437_s12, %s2437_s12, %s2436_s16  }
  0x4a   : > { %s2440_s24 = sand.u32 1, %s1933_s27   ;;  %s1801_s25 = scalar_lea.hbm %s1800_s9, 16 }
  0x4b   : > { %s441_s18 = scalar_lea.sflag [#allocation4], %s2440_s24  ;;  %p1802_p1 = scmp.ne.s32.totalorder %s1800_s9, %s1801_s25 }
  0x4c   : > { %s1806_s21 = scalar_lea.hbm %s2386_s0, 32  ;;  %p1807_p10 = scmp.lt.s32.totalorder %s1800_s9, %s2386_s0 }
  0x4d   : > { %p1804_p11 = pnand %p1802_p1, %p1713_p12  ;;  %p1808_p13 = scmp.lt.s32.totalorder %s1806_s21, %s1801_s25 }
  0x4f   : > { %p1805_p2 = pneg %p1804_p11  ;;  %p1809_p0 = por %p1808_p13, %p1807_p10 }
  0x51   : > { %p1810_p5 = pnand %p1809_p0, %p1805_p2 }
  0x53   : > { %1813 = shalt.err (!%p1810_p5)
}
  0x54   : > { %1523 = dma.hbm_to_vmem [thread:$0]  (!%p2119_p9), %s451_s5, 256, %s453_s15, %s441_s18, %s2437_s12, %s2437_s12, %s2436_s16  }
  0x55   : > { %s493_s24 = scalar_lea.hbm %s2388_s2, %s2117_s30  ;;  %s488_s1 = scalar_lea.vmem [#allocation8], %s2114_s3 }
  0x56   : > { %s496_s22 = sshll.u32 %s488_s1, 4  ;;  %s494_s9 = sshll.u32 %s493_s24, 4  ;;  %s497_s22 = int_to_ptr.vmem [resolvable:$true] %s496_s22  ;;  %s495_s9 = int_to_ptr.hbm [resolvable:$true] %s494_s9 }
  0x57   : > { %s1829_s25 = sshra.s32 %s495_s9, 4  ;;  %s1836_s5 = scalar_lea.hbm %s2388_s2, 32  ;;  %s1830_s25 = int_to_ptr.hbm [resolvable:$true] %s1829_s25 }
  0x58   : > { %s1831_s21 = scalar_lea.hbm %s1830_s25, 16  ;;  %p1837_p2 = scmp.lt.s32.totalorder %s1830_s25, %s2388_s2 }
  0x59   : > { %p1832_p7 = scmp.ne.s32.totalorder %s1830_s25, %s1831_s21  ;;  %p1838_p10 = scmp.lt.s32.totalorder %s1836_s5, %s1831_s21 }
  0x5b   : > { %p1834_p1 = pnand %p1832_p7, %p1713_p12  ;;  %p1839_p13 = por %p1838_p10, %p1837_p2 }
  0x5d   : > { %p1835_p11 = pneg %p1834_p1 }
  0x5f   : > { %p1840_p0 = pnand %p1839_p13, %p1835_p11 }
  0x61   : > { %1843 = shalt.err (!%p1840_p0)
}
  0x62   : > { %1529 = dma.hbm_to_vmem [thread:$0]  (!%p2119_p9), %s495_s9, 256, %s497_s22, %s2129_s20, %s2437_s12, %s2437_s12, %s2436_s16  }
  0x63   : > { %508 = sbr.rel (%p2066_p8) target bundleno = 1504 (0x5e0), region = 72  ;;  %s2208_s3 = sand.u32 (!%p2066_p8), 1, %s1929_s26  }
  0x64   : > { %s2211_s30 = sshll.u32 (!%p2066_p8), %s2208_s3, 4  ;;  %s511_s13 = scalar_lea.sflag (!%p2066_p8), [#allocation4], %s2208_s3 }
  0x65   : > { %s514_s23 = scalar_lea.vmem (!%p2066_p8), [#allocation3], %s2211_s30 }
  0x68   : > { %1904 = dma.done.wait (%p2053_p4), %s511_s13, 256  }
  0x69   : > { %1906 = vsyncadd (%p2053_p4), %s511_s13, 4294967040  ;;  %s520_s12 = sand.u32 1, %s2044_s29   ;;  %s524_s20 = scalar_lea.vmem [#allocation6], %s2211_s30 }
  0x6a   : > { %s521_s19 = scalar_lea.sflag [#allocation7], %s520_s12 }
  0x6b   : > { %1908 = dma.done.wait (%p2053_p4), %s521_s19, 512  }
  0x6c   : > { %1910 = vsyncadd (%p2053_p4), %s521_s19, 4294966784  ;;  %s534_s7 = scalar_lea.vmem [#allocation8], %s2211_s30  ;;  %p2441_p8 = scmp.eq.s32.totalorder %s2044_s29, 0 }
  0x6e   : > { %1912 = dma.done.wait (%p2441_p8), [#allocation10], 1024   ;;  %p2442_p9 = pmov %p2441_p8 }
  0x6f   : > { %p2443_p12 = pmov %p2441_p8 }
  0x70   : > { %1914 = vsyncadd (%p2442_p9), [#allocation10], 4294966272 }
  0x71   : > { %1916 = dma.done.wait (%p2443_p12), [#allocation13], 1024   ;;  %p2444_p5 = pmov %p2441_p8 }
  0x72   : > { %v617_v0 = vld [vmem:[#allocation9 + $0x18] sm:$0xff]  ;;  %v616_v2 = vld [vmem:[#allocation9 + $0x10] sm:$0xff]  ;;  %v615_v4 = vld [vmem:[#allocation9 + $0x8] sm:$0xff]  ;;  %vm622_vm0 = vcmask 261120   ;;  %s1945_s24 = smov 120   ;;  %vm728_vm1 = vcmask 64512  }
  0x73   : > { %1918 = vsyncadd (%p2444_p5), [#allocation13], 4294966272  ;;  %v657_v1 = vld [vmem:[#allocation11 + $0x18] sm:$0xff]  ;;  %641 = vmatpush.msra.mxu0 %v617_v0  ;;  %v656_v3 = vld [vmem:[#allocation11 + $0x10] sm:$0xff]  ;;  %s1946_s9 = smov 112   ;;  %s1947_s25 = smov 104  }
  0x74   : > { %680 = vmatpush.msra.mxu1 %v657_v1  ;;  %v655_v5 = vld [vmem:[#allocation11 + $0x8] sm:$0xff]  ;;  %v614_v6 = vld [vmem:[#allocation9] sm:$0xff]  ;;  %v1605_v12 = vld [vmem:[%s2390_s4] ss:$0 sm:$0xff]  ;;  %vm764_vm2 = vcmask 130048   ;;  %s1948_s17 = smov 8  }
  0x75   : > { %642 = vmatpush.msra.mxu0 %v616_v2  ;;  %v654_v7 = vld [vmem:[#allocation11] sm:$0xff]  ;;  %v2245_v10 = vld [vmem:[%s514_s23 + $0x8] sm:$0xff]  ;;  %v1606_v17 = vld [vmem:[%s2392_s6] ss:$0 sm:$0xff]  ;;  %s1949_s5 = smov 16   ;;  %s1950_s15 = smov 24  }
  0x76   : > { %681 = vmatpush.msra.mxu1 %v656_v3  ;;  %v2236_v8 = vld [vmem:[%s514_s23] sm:$0xff]  ;;  %v611_v11 = vld [vmem:[%s524_s20 + $0x8] sm:$0xff]  ;;  %vm924_vm3 = vcmask 130112   ;;  %vm1031_vm4 = vcmask 195712   ;;  %vm1138_vm5 = vcmask 261312   ;;  %s607_s14 = scalar_lea.vmem [#allocation15], %s2211_s30 }
  0x77   : > { %v610_v9 = vld [vmem:[%s524_s20] sm:$0xff]  ;;  %643 = vmatpush.msra.mxu0 %v615_v4  ;;  %v694_v28 = vld [vmem:[#allocation12 + $0x18] sm:$0xff]  ;;  %v692_v30 = vld [vmem:[#allocation12 + $0x8] sm:$0xff]  ;;  %s1482_s16 = sshll.u32 %s2044_s29, 4  ;;  %s2446_s22 = sld [smem:[#allocation33_spill]] }
  0x78   : > { %682 = vmatpush.msra.mxu1 %v655_v5  ;;  %v693_v29 = vld [vmem:[#allocation12 + $0x10] sm:$0xff]  ;;  %717 = vmatpush.msra.mxu2 %v694_v28  ;;  %v691_v32 = vld [vmem:[#allocation12] sm:$0xff]  ;;  %v613_v37 = vld [vmem:[%s534_s7 + $0x8] sm:$0xff]  ;;  %s1260_s30 = sshll.u32 %s607_s14, 4  ;;  %s1248_s28 = scalar_lea.sflag [#allocation5], %s2208_s3  ;;  %s1261_s30 = int_to_ptr.vmem [resolvable:$true] %s1260_s30 }
  0x79   : > { %644 = vmatpush.msra.mxu0 %v614_v6  ;;  %v612_v34 = vld [vmem:[%s534_s7] sm:$0xff]  ;;  %s2445_s7 = sld [smem:[#allocation32_spill]] }
  0x7a   : > { %683 = vmatpush.msra.mxu1 %v654_v7  ;;  %1442 = vmatmul.msk.f32.vlgmr.msra.gmra.mxu0 %vm622_vm0, %v2236_v8  ;;  %v1607_v54 = vld [vmem:[%s2394_s8] ss:$0 sm:$0xff] }
  0x7b   : > { %1444 = vmatmul.msk.f32.vlgmr.msra.gmra.mxu1 %vm622_vm0, %v610_v9  ;;  %718 = vmatpush.msra.mxu2 %v693_v29 }
  0x7d   : > { %719 = vmatpush.msra.mxu2 %v692_v30  ;;  %s1879_s13 = scalar_lea.hbm %s2446_s22, 32 }
  0x7f   : > { %720 = vmatpush.msra.mxu2 %v691_v32 }
  0x80   : > { %1446 = vmatmul.msk.f32.vlgmr.msra.gmra.mxu2 %vm622_vm0, %v612_v34 }
  0x82   : > { %1443 = vmatmul.msk.f32.gmra.mxu0 %vm622_vm0, %v2245_v10 }
  0x83   : > { %1445 = vmatmul.msk.f32.gmra.mxu1 %vm622_vm0, %v611_v11 }
  0x88   : > { %1447 = vmatmul.msk.f32.gmra.mxu2 %vm622_vm0, %v613_v37 }
  0xf7   : > { %v646_v13 = vpop.f32.mrf.mxu0 }
  0xf8   : > { %v685_v14 = vpop.f32.mrf.mxu1  ;;  %v647_v15 = vadd.f32 %v1605_v12, %v646_v13 }
  0xf9   : > { %v686_v23 = vadd.f32 %v1606_v17, %v685_v14 }
  0xfa   : > { %v652_v16 = vmul.f32 0.35355338, %v647_v15 }
  0xfc   : > { %818 = vrot.lane.b32.xlu1 %v652_v16, %s1945_s24 }
  0xff   : > { %v649_v18 = vpop.f32.mrf.mxu0 }
 0x100   : > { %v688_v19 = vpop.f32.mrf.mxu1  ;;  %v650_v20 = vadd.f32 %v1605_v12, %v649_v18 }
 0x101   : > { %v689_v21 = vadd.f32 %v1606_v17, %v688_v19 }
 0x102   : > { %v653_v22 = vmul.f32 0.35355338, %v650_v20 }
 0x103   : > { %933 = vrot.lane.b32.xlu2 %v689_v21, %s1946_s9  ;;  %824 = vrot.lane.b32.xlu0 %v689_v21, %s1945_s24  ;;  %v722_v50 = vpop.f32.mrf.mxu2 }
 0x104   : > { %1448 = vmatpush.xpose.msk.msra.mxu3 %vm728_vm1, %v689_v21  ;;  %820 = vrot.lane.b32.xlu1 %v653_v22, %s1945_s24  ;;  %v723_v0 = vadd.f32 %v1607_v54, %v722_v50 }
 0x108   : > { %1449 = vmatpush.xpose.msk.msra.mxu3 %vm728_vm1, %v686_v23 }
 0x10b   : > { %1450 = vmatmul.msk.f32.vlgmr.msra.gmra.mxu3 %vm728_vm1, %v652_v16  ;;  %1040 = vrot.lane.b32.xlu2 %v689_v21, %s1947_s25  ;;  %v725_v59 = vpop.f32.mrf.mxu2 }
 0x10c   : > { %822 = vrot.lane.b32.xlu0 %v686_v23, %s1945_s24  ;;  %1038 = vrot.lane.b32.xlu1 %v686_v23, %s1947_s25  ;;  %v726_v63 = vadd.f32 %v1607_v54, %v725_v59 }
 0x10e   : > { %807 = vmatpush.msrb.mxu0 %v726_v63  ;;  %v1590_v11 = vpack.i.bf16 %v723_v0, %v726_v63 }
 0x110   : > { %808 = vmatpush.msrb.mxu0 %v723_v0 }
 0x113   : > { %1451 = vmatmul.msk.f32.gmra.mxu3 %vm728_vm1, %v653_v22  ;;  %927 = vrot.lane.b32.xlu2 %v652_v16, %s1946_s9 }
 0x114   : > { %931 = vrot.lane.b32.xlu0 %v686_v23, %s1946_s9  ;;  %929 = vrot.lane.b32.xlu1 %v653_v22, %s1946_s9 }
 0x11b   : > { %1036 = vrot.lane.b32.xlu2 %v653_v22, %s1947_s25 }
 0x11c   : > { %1034 = vrot.lane.b32.xlu0 %v652_v16, %s1947_s25 }
 0x15d   : > { %v934_v24 = vpop.permute.xlu2 %933 }
 0x15e   : > { %1460 = vmatpush.xpose.msk.msrb.mxu3 %vm728_vm1, %v934_v24 }
 0x165   : > { %v1041_v33 = vpop.permute.xlu2 %1040 }
 0x16d   : > { %v928_v38 = vpop.permute.xlu2 %927 }
 0x16e   : > { %v819_v25 = vpop.permute.xlu1 %818 }
 0x175   : > { %v825_v26 = vpop.permute.xlu0 %824  ;;  %v1037_v45 = vpop.permute.xlu2 %1036 }
 0x176   : > { %1454 = vmatpush.xpose.msk.msrb.mxu1 %vm728_vm1, %v825_v26  ;;  %v821_v27 = vpop.permute.xlu1 %820 }
 0x17e   : > { %v823_v31 = vpop.permute.xlu0 %822  ;;  %v1039_v35 = vpop.permute.xlu1 %1038 }
 0x17f   : > { %1455 = vmatpush.xpose.msk.msrb.mxu1 %vm728_vm1, %v823_v31 }
 0x182   : > { %1456 = vmatmul.msk.f32.vlgmr.msrb.gmra.mxu1 %vm728_vm1, %v819_v25 }
 0x183   : > { %1466 = vmatpush.xpose.msk.msra.mxu1 %vm728_vm1, %v1041_v33 }
 0x186   : > { %v932_v36 = vpop.permute.xlu0 %931  ;;  %v930_v41 = vpop.permute.xlu1 %929 }
 0x187   : > { %1467 = vmatpush.xpose.msk.msra.mxu1 %vm728_vm1, %v1039_v35  ;;  %1461 = vmatpush.xpose.msk.msrb.mxu3 %vm728_vm1, %v932_v36 }
 0x18a   : > { %1457 = vmatmul.msk.f32.gmra.mxu1 %vm728_vm1, %v821_v27  ;;  %1462 = vmatmul.msk.f32.vlgmr.msrb.gmra.mxu3 %vm728_vm1, %v928_v38 }
 0x18e   : > { %v758_v39 = vpop.f32.mrf.mxu3  ;;  %v1035_v42 = vpop.permute.xlu0 %1034 }
 0x18f   : > { %v765_v40 = vsel %vm764_vm2, %v758_v39, -inf }
 0x190   : > { %766 = vmax.xlane.f32.xlu1 %v765_v40 }
 0x192   : > { %1463 = vmatmul.msk.f32.gmra.mxu3 %vm728_vm1, %v930_v41  ;;  %1468 = vmatmul.msk.f32.vlgmr.msra.gmra.mxu1 %vm728_vm1, %v1035_v42 }
 0x196   : > { %v761_v43 = vpop.f32.mrf.mxu3 }
 0x197   : > { %v768_v44 = vsel %vm764_vm2, %v761_v43, -inf }
 0x198   : > { %769 = vmax.xlane.f32.xlu2 %v768_v44 }
 0x19a   : > { %1469 = vmatmul.msk.f32.gmra.mxu1 %vm728_vm1, %v1037_v45 }
 0x1ff   : > { %v851_v46 = vpop.f32.mrf.mxu1 }
 0x200   : > { %v857_v47 = vsel %vm764_vm2, %v851_v46, -inf }
 0x201   : > { %858 = vmax.xlane.f32.xlu0 %v857_v47 }
 0x203   : > { %v767_v48 = vpop.xlane.xlu1 %766 }
 0x204   : > { %v771_v49 = vsub.f32 %v758_v39, %v767_v48 }
 0x206   : > { %v773_v51 = vmul.f32 1.442695, %v771_v49 }
 0x207   : > { %v854_v52 = vpop.f32.mrf.mxu1 }
 0x208   : > { %1611 = vpow2.f32 %v773_v51  ;;  %v860_v53 = vsel %vm764_vm2, %v854_v52, -inf }
 0x209   : > { %861 = vmax.xlane.f32.xlu2 %v860_v53 }
 0x20b   : > { %v770_v55 = vpop.xlane.xlu2 %769 }
 0x20c   : > { %v772_v60 = vsub.f32 %v761_v43, %v770_v55 }
 0x20d   : > { %v960_v56 = vpop.f32.mrf.mxu3 }
 0x20e   : > { %v1612_v57 = vpop.eup %1611  ;;  %v966_v58 = vsel %vm764_vm2, %v960_v56, -inf  ;;  %v775_v1 = vmul.f32 1.442695, %v772_v60 }
 0x20f   : > { %v1067_v61 = vpop.f32.mrf.mxu1  ;;  %967 = vmax.xlane.f32.xlu1 %v966_v58  ;;  %v777_v62 = vsel %vm764_vm2, %v1612_v57, 0.0 }
 0x210   : > { %1613 = vpow2.f32 %v775_v1  ;;  %v1073_v7 = vsel %vm764_vm2, %v1067_v61, -inf }
 0x211   : > { %778 = vadd.xlane.f32.xlu2 %v777_v62 }
 0x215   : > { %v2301_v2 = vpop.f32.mrf.mxu3 }
 0x216   : > { %v969_v3 = vsel %vm764_vm2, %v2301_v2, -inf  ;;  %v1614_v6 = vpop.eup %1613 }
 0x217   : > { %v1070_v4 = vpop.f32.mrf.mxu1  ;;  %970 = vmax.xlane.f32.xlu0 %v969_v3  ;;  %v780_v9 = vsel %vm764_vm2, %v1614_v6, 0.0 }
 0x218   : > { %v1076_v5 = vsel %vm764_vm2, %v1070_v4, -inf }
 0x219   : > { %1077 = vmax.xlane.f32.xlu2 %v1076_v5 }
 0x21f   : > { %1074 = vmax.xlane.f32.xlu0 %v1073_v7 }
 0x221   : > { %781 = vadd.xlane.f32.xlu2 %v780_v9 }
 0x233   : > { %1591 = vrot.lane.b32.xlu0 %v1590_v11, %s1945_s24 }
 0x274   : > { %v859_v12 = vpop.xlane.xlu0 %858 }
 0x275   : > { %v863_v13 = vsub.f32 %v851_v46, %v859_v12 }
 0x277   : > { %v865_v14 = vmul.f32 1.442695, %v863_v13 }
 0x279   : > { %1615 = vpow2.f32 %v865_v14 }
 0x27c   : > { %v862_v15 = vpop.xlane.xlu2 %861 }
 0x27d   : > { %v864_v16 = vsub.f32 %v854_v52, %v862_v15 }
 0x27f   : > { %v1616_v17 = vpop.eup %1615  ;;  %v867_v18 = vmul.f32 1.442695, %v864_v16 }
 0x280   : > { %v869_v19 = vsel %vm764_vm2, %v1616_v17, 0.0 }
 0x281   : > { %1617 = vpow2.f32 %v867_v18  ;;  %870 = vadd.xlane.f32.xlu1 %v869_v19 }
 0x282   : > { %v968_v20 = vpop.xlane.xlu1 %967 }
 0x283   : > { %v972_v21 = vsub.f32 %v960_v56, %v968_v20 }
 0x284   : > { %v779_v22 = vpop.xlane.xlu2 %778 }
 0x285   : > { %v974_v23 = vmul.f32 1.442695, %v972_v21  ;;  %1619 = vrcp.f32 %v779_v22 }
 0x287   : > { %v1618_v24 = vpop.eup %1617  ;;  %1621 = vpow2.f32 %v974_v23 }
 0x288   : > { %v872_v25 = vsel %vm764_vm2, %v1618_v24, 0.0 }
 0x289   : > { %873 = vadd.xlane.f32.xlu1 %v872_v25  ;;  %v1145_v25 = vld [vmem:[#allocation14 + $0x10] sm:$0xff] }
 0x28a   : > { %v971_v26 = vpop.xlane.xlu0 %970 }
 0x28b   : > { %v1620_v27 = vpop.eup %1619  ;;  %v973_v44 = vsub.f32 %v2301_v2, %v971_v26  ;;  %v1144_v26 = vld [vmem:[#allocation14 + $0x8] sm:$0xff] }
 0x28c   : > { %v1078_v28 = vpop.xlane.xlu2 %1077  ;;  %v785_v29 = vmul.f32 %v1620_v27, %v1612_v57  ;;  %v1143_v27 = vld [vmem:[#allocation14] sm:$0xff] }
 0x28d   : > { %v1622_v30 = vpop.eup %1621  ;;  %v1080_v31 = vsub.f32 %v1070_v4, %v1078_v28  ;;  %v976_v45 = vmul.f32 1.442695, %v973_v44 }
 0x28e   : > { %1452 = vmatmul.msk.f32.vlgmr.msrb.gmra.mxu0 %vm764_vm2, %v785_v29  ;;  %v978_v32 = vsel %vm764_vm2, %v1622_v30, 0.0 }
 0x28f   : > { %v1083_v33 = vmul.f32 1.442695, %v1080_v31  ;;  %979 = vadd.xlane.f32.xlu2 %v978_v32 }
 0x291   : > { %1623 = vpow2.f32 %v1083_v33  ;;  %v1608_v33 = vld [vmem:[%s2396_s10] ss:$0 sm:$0xff] }
 0x292   : > { %v1075_v34 = vpop.xlane.xlu0 %1074 }
 0x293   : > { %v1079_v35 = vsub.f32 %v1067_v61, %v1075_v34 }
 0x294   : > { %v782_v36 = vpop.xlane.xlu2 %781 }
 0x295   : > { %v1081_v37 = vmul.f32 1.442695, %v1079_v35  ;;  %1625 = vrcp.f32 %v782_v36 }
 0x297   : > { %v1624_v38 = vpop.eup %1623  ;;  %1627 = vpow2.f32 %v1081_v37 }
 0x298   : > { %v1088_v39 = vsel %vm764_vm2, %v1624_v38, 0.0  ;;  %1629 = vpow2.f32 %v976_v45 }
 0x299   : > { %1089 = vadd.xlane.f32.xlu0 %v1088_v39 }
 0x29b   : > { %v1626_v40 = vpop.eup %1625 }
 0x29c   : > { %v786_v41 = vmul.f32 %v1626_v40, %v1614_v6 }
 0x29d   : > { %v1628_v42 = vpop.eup %1627 }
 0x29e   : > { %1453 = vmatmul.msk.f32.gmra.mxu0 %vm764_vm2, %v786_v41  ;;  %v1085_v43 = vsel %vm764_vm2, %v1628_v42, 0.0  ;;  %v1630_v49 = vpop.eup %1629 }
 0x29f   : > { %1086 = vadd.xlane.f32.xlu1 %v1085_v43  ;;  %v981_v50 = vsel %vm764_vm2, %v1630_v49, 0.0 }
 0x2a5   : > { %v1592_v46 = vpop.permute.xlu0 %1591 }
 0x2a6   : > { %v1593_v47 = vunpack.i.l.bf16 %v1592_v46  ;;  %v1594_v48 = vunpack.i.h.bf16 %v1592_v46 }
 0x2a7   : > { %1601 = vrot.lane.b32.xlu2 %v1590_v11, %s1946_s9 }
 0x2a8   : > { %907 = vmatpush.msrb.mxu2 %v1593_v47 }
 0x2aa   : > { %908 = vmatpush.msrb.mxu2 %v1594_v48 }
 0x2b8   : > { %1596 = vrot.lane.b32.xlu1 %v1590_v11, %s1947_s25  ;;  %s1259_s25 = scalar_lea.hbm %s2446_s22, %s1482_s16 }
 0x2b9   : > { %s1262_s21 = sshll.u32 %s1259_s25, 4  ;;  %s1263_s21 = int_to_ptr.hbm [resolvable:$true] %s1262_s21 }
 0x2ba   : > { %s1873_s29 = sshra.s32 %s1263_s21, 4  ;;  %s1874_s29 = int_to_ptr.hbm [resolvable:$true] %s1873_s29 }
 0x2bb   : > { %p1880_p11 = scmp.lt.s32.totalorder %s1874_s29, %s2446_s22 }
 0x2e2   : > { %982 = vadd.xlane.f32.xlu1 %v981_v50 }
 0x2f4   : > { %v871_v51 = vpop.xlane.xlu1 %870 }
 0x2f5   : > { %1631 = vrcp.f32 %v871_v51 }
 0x2fb   : > { %v1632_v52 = vpop.eup %1631 }
 0x2fc   : > { %v874_v53 = vpop.xlane.xlu1 %873  ;;  %v877_v54 = vmul.f32 %v1632_v52, %v1616_v17 }
 0x2fd   : > { %1633 = vrcp.f32 %v874_v53 }
 0x2fe   : > { %1458 = vmatmul.msk.f32.vlgmr.msrb.gmra.mxu2 %vm764_vm2, %v877_v54 }
 0x302   : > { %v980_v55 = vpop.xlane.xlu2 %979 }
 0x303   : > { %v1634_v56 = vpop.eup %1633  ;;  %1635 = vrcp.f32 %v980_v55 }
 0x304   : > { %v878_v57 = vmul.f32 %v1634_v56, %v1618_v24  ;;  %v1146_v24 = vld [vmem:[#allocation14 + $0x18] sm:$0xff] }
 0x305   : > { %1169 = vmatpush.msra.mxu3 %v1146_v24 }
 0x306   : > { %1459 = vmatmul.msk.f32.gmra.mxu2 %vm764_vm2, %v878_v57 }
 0x307   : > { %1170 = vmatpush.msra.mxu3 %v1145_v25 }
 0x309   : > { %v1636_v59 = vpop.eup %1635  ;;  %1171 = vmatpush.msra.mxu3 %v1144_v26 }
 0x30a   : > { %v1602_v58 = vpop.permute.xlu2 %1601  ;;  %v986_v63 = vmul.f32 %v1636_v59, %v1622_v30 }
 0x30b   : > { %v1603_v60 = vunpack.i.l.bf16 %v1602_v58  ;;  %v810_v61 = vpop.f32.mrf.mxu0  ;;  %v1604_v62 = vunpack.i.h.bf16 %v1602_v58  ;;  %1172 = vmatpush.msra.mxu3 %v1143_v27 }
 0x30c   : > { %816 = vst.msk [vmem:[#allocation2] sm:$0xff] %vm728_vm1, %v810_v61  ;;  %v1090_v2 = vpop.xlane.xlu0 %1089 }
 0x30d   : > { %1014 = vmatpush.msra.mxu0 %v1603_v60 }
 0x30f   : > { %1015 = vmatpush.msra.mxu0 %v1604_v62 }
 0x310   : > { %1464 = vmatmul.msk.f32.vlgmr.msra.gmra.mxu0 %vm764_vm2, %v986_v63 }
 0x312   : > { %v1087_v1 = vpop.xlane.xlu1 %1086 }
 0x313   : > { %1637 = vrcp.f32 %v1087_v1 }
 0x314   : > { %1639 = vrcp.f32 %v1090_v2  ;;  %v1609_v2 = vld [vmem:[%s2397_s11] ss:$0 sm:$0xff] }
 0x319   : > { %v1638_v4 = vpop.eup %1637 }
 0x31a   : > { %v1093_v7 = vmul.f32 %v1638_v4, %v1628_v42  ;;  %v1640_v9 = vpop.eup %1639  ;;  %v1951_v42 = vmov 32.0   ;;  %v1610_v4 = vld [vmem:[%s2445_s7] ss:$0 sm:$0xff] }
 0x31b   : > { %v813_v0 = vpop.f32.mrf.mxu0  ;;  %v1094_v11 = vmul.f32 %v1640_v9, %v1624_v38 }
 0x31c   : > { %817 = vst.msk [vmem:[#allocation2 + $0x8] sm:$0xff] %vm728_vm1, %v813_v0 }
 0x32a   : > { %v1597_v3 = vpop.permute.xlu1 %1596 }
 0x32b   : > { %v1598_v5 = vunpack.i.l.bf16 %v1597_v3  ;;  %v1599_v6 = vunpack.i.h.bf16 %v1597_v3 }
 0x32d   : > { %1121 = vmatpush.msra.mxu2 %v1598_v5 }
 0x32f   : > { %1122 = vmatpush.msra.mxu2 %v1599_v6 }
 0x330   : > { %1470 = vmatmul.msk.f32.vlgmr.msra.gmra.mxu2 %vm764_vm2, %v1093_v7 }
 0x338   : > { %1471 = vmatmul.msk.f32.gmra.mxu2 %vm764_vm2, %v1094_v11 }
 0x355   : > { %v983_v12 = vpop.xlane.xlu1 %982 }
 0x356   : > { %1641 = vrcp.f32 %v983_v12 }
 0x357   : > { %1643 = vrcp.f32 %v1951_v42 }
 0x35c   : > { %v1642_v13 = vpop.eup %1641 }
 0x35d   : > { %v987_v14 = vmul.f32 %v1642_v13, %v1630_v49  ;;  %v1644_v43 = vpop.eup %1643 }
 0x35e   : > { %v1191_v44 = vmul.f32 32.0, %v1644_v43  ;;  %vm1195_vm6 = vweird.f32 %v1644_v43 }
 0x35f   : > { %1465 = vmatmul.msk.f32.gmra.mxu0 %vm764_vm2, %v987_v14 }
 0x360   : > { %v1192_v45 = vsub.f32 1.0, %v1191_v44 }
 0x362   : > { %v1193_v46 = vmul.f32 %v1644_v43, %v1192_v45 }
 0x364   : > { %v1194_v47 = vadd.f32 %v1644_v43, %v1193_v46 }
 0x366   : > { %v1196_v48 = vsel %vm1195_vm6, %v1644_v43, %v1194_v47 }
 0x381   : > { %v910_v15 = vpop.f32.mrf.mxu2 }
 0x382   : > { %918 = vrot.lane.b32.xlu2 %v910_v15, %s1948_s17 }
 0x389   : > { %v913_v17 = vpop.f32.mrf.mxu2 }
 0x38d   : > { %v1017_v16 = vpop.f32.mrf.mxu0 }
 0x38e   : > { %1025 = vrot.lane.b32.xlu2 %v1017_v16, %s1949_s5 }
 0x396   : > { %920 = vrot.lane.b32.xlu2 %v913_v17, %s1948_s17 }
 0x3b3   : > { %v1124_v18 = vpop.f32.mrf.mxu2 }
 0x3b4   : > { %1132 = vrot.lane.b32.xlu0 %v1124_v18, %s1950_s15 }
 0x3bb   : > { %v1127_v21 = vpop.f32.mrf.mxu2 }
 0x3dc   : > { %v919_v19 = vpop.permute.xlu2 %918  ;;  %v1020_v20 = vpop.f32.mrf.mxu0 }
 0x3dd   : > { %925 = vst.msk [vmem:[#allocation2] sm:$0xff] %vm924_vm3, %v919_v19  ;;  %1027 = vrot.lane.b32.xlu2 %v1020_v20, %s1949_s5  ;;  %s1875_s5 = scalar_lea.hbm %s1874_s29, 16 }
 0x3de   : > { %p1876_p4 = scmp.ne.s32.totalorder %s1874_s29, %s1875_s5  ;;  %p1881_p2 = scmp.lt.s32.totalorder %s1879_s13, %s1875_s5 }
 0x3e0   : > { %p1877_p7 = pnand %p1876_p4, %p2103_p3  ;;  %p1882_p10 = por %p1881_p2, %p1880_p11 }
 0x3e2   : > { %p1878_p1 = pneg %p1877_p7 }
 0x3e4   : > { %p1883_p13 = pnand %p1882_p10, %p1878_p1 }
 0x3e5   : > { %1134 = vrot.lane.b32.xlu2 %v1127_v21, %s1950_s15 }
 0x3e8   : > { %v1026_v22 = vpop.permute.xlu2 %1025 }
 0x3e9   : > { %1032 = vst.msk [vmem:[#allocation2] sm:$0xff] %vm1031_vm4, %v1026_v22 }
 0x3f0   : > { %v921_v23 = vpop.permute.xlu2 %920 }
 0x3f1   : > { %926 = vst.msk [vmem:[#allocation2 + $0x8] sm:$0xff] %vm924_vm3, %v921_v23 }
 0x426   : > { %v1133_v28 = vpop.permute.xlu0 %1132 }
 0x427   : > { %1139 = vst.msk [vmem:[#allocation2] sm:$0xff] %vm1138_vm5, %v1133_v28 }
 0x42e   : > { %v1141_v29 = vld [vmem:[#allocation2] sm:$0xff] }
 0x42f   : > { %1472 = vmatmul.msk.f32.vlgmr.msra.gmra.mxu3 %vm622_vm0, %v1141_v29 }
 0x437   : > { %v1028_v30 = vpop.permute.xlu2 %1027 }
 0x438   : > { %1033 = vst.msk [vmem:[#allocation2 + $0x8] sm:$0xff] %vm1031_vm4, %v1028_v30 }
 0x43f   : > { %v1135_v31 = vpop.permute.xlu2 %1134 }
 0x440   : > { %1140 = vst.msk [vmem:[#allocation2 + $0x8] sm:$0xff] %vm1138_vm5, %v1135_v31 }
 0x447   : > { %v1142_v32 = vld [vmem:[#allocation2 + $0x8] sm:$0xff] }
 0x448   : > { %1473 = vmatmul.msk.f32.gmra.mxu3 %vm622_vm0, %v1142_v32 }
 0x4b2   : > { %v1174_v34 = vpop.f32.mrf.mxu3 }
 0x4b3   : > { %v1175_v35 = vadd.f32 %v1608_v33, %v1174_v34 }
 0x4b5   : > { %v1180_v36 = vadd.f32 %v1175_v35, %v2236_v8 }
 0x4b7   : > { %v1184_v37 = vsel %vm622_vm0, %v1180_v36, 0.0 }
 0x4b8   : > { %1185 = vadd.xlane.f32.xlu0 %v1184_v37 }
 0x4cb   : > { %v1177_v38 = vpop.f32.mrf.mxu3 }
 0x4cc   : > { %v1178_v39 = vadd.f32 %v1608_v33, %v1177_v38 }
 0x4ce   : > { %v1181_v40 = vadd.f32 %v1178_v39, %v2245_v10 }
 0x4d0   : > { %v1187_v41 = vsel %vm622_vm0, %v1181_v40, 0.0 }
 0x4d1   : > { %1188 = vadd.xlane.f32.xlu1 %v1187_v41 }
 0x52b   : > { %v1186_v8 = vpop.xlane.xlu0 %1185 }
 0x52c   : > { %v1197_v49 = vmul.f32 %v1196_v48, %v1186_v8 }
 0x52e   : > { %v1199_v50 = vsub.f32 %v1180_v36, %v1197_v49 }
 0x530   : > { %v1201_v51 = vmul.f32 %v1199_v50, %v1199_v50 }
 0x532   : > { %v1203_v52 = vsel %vm622_vm0, %v1201_v51, 0.0 }
 0x533   : > { %1204 = vadd.xlane.f32.xlu2 %v1203_v52 }
 0x544   : > { %v1189_v10 = vpop.xlane.xlu1 %1188 }
 0x545   : > { %v1198_v53 = vmul.f32 %v1196_v48, %v1189_v10 }
 0x547   : > { %v1200_v54 = vsub.f32 %v1181_v40, %v1198_v53 }
 0x549   : > { %v1202_v55 = vmul.f32 %v1200_v54, %v1200_v54 }
 0x54b   : > { %v1206_v56 = vsel %vm622_vm0, %v1202_v55, 0.0 }
 0x54c   : > { %1207 = vadd.xlane.f32.xlu1 %v1206_v56 }
 0x5a6   : > { %v1205_v57 = vpop.xlane.xlu2 %1204 }
 0x5a7   : > { %v1209_v58 = vmul.f32 %v1205_v57, %v1196_v48 }
 0x5a9   : > { %v1211_v59 = vadd.f32 1e-05, %v1209_v58 }
 0x5ab   : > { %1645 = vrsqrt.f32 %v1211_v59  ;;  %vm1219_vm8 = vweird.f32 %v1211_v59 }
 0x5b1   : > { %v1646_v60 = vpop.eup %1645 }
 0x5b2   : > { %v1214_v61 = vmul.f32 %v1646_v60, %v1211_v59  ;;  %vm1220_vm7 = vweird.f32 %v1646_v60 }
 0x5b3   : > { %vm1221_vm9 = vmor %vm1219_vm8, %vm1220_vm7 }
 0x5b4   : > { %v1215_v62 = vmul.f32 %v1646_v60, %v1214_v61 }
 0x5b6   : > { %v1216_v63 = vmul.f32 0.5, %v1215_v62 }
 0x5b8   : > { %v1217_v0 = vsub.f32 1.5, %v1216_v63 }
 0x5ba   : > { %v1218_v1 = vmul.f32 %v1646_v60, %v1217_v0 }
 0x5bc   : > { %v1222_v3 = vsel %vm1221_vm9, %v1646_v60, %v1218_v1 }
 0x5bd   : > { %v1233_v5 = vmul.f32 %v1222_v3, %v1199_v50 }
 0x5bf   : > { %v1238_v6 = vmul.f32 %v1609_v2, %v1233_v5  ;;  %v1208_v7 = vpop.xlane.xlu1 %1207 }
 0x5c0   : > { %v1210_v9 = vmul.f32 %v1208_v7, %v1196_v48 }
 0x5c1   : > { %v1243_v11 = vadd.f32 %v1610_v4, %v1238_v6 }
 0x5c2   : > { %v1212_v12 = vadd.f32 1e-05, %v1210_v9 }
 0x5c3   : > { %1245 = vst.msk [vmem:[%s607_s14] sm:$0xff] %vm622_vm0, %v1243_v11 }
 0x5c4   : > { %1647 = vrsqrt.f32 %v1212_v12  ;;  %vm1229_vm11 = vweird.f32 %v1212_v12 }
 0x5ca   : > { %v1648_v13 = vpop.eup %1647 }
 0x5cb   : > { %v1224_v14 = vmul.f32 %v1648_v13, %v1212_v12  ;;  %vm1230_vm10 = vweird.f32 %v1648_v13 }
 0x5cc   : > { %vm1231_vm12 = vmor %vm1229_vm11, %vm1230_vm10 }
 0x5cd   : > { %v1225_v15 = vmul.f32 %v1648_v13, %v1224_v14 }
 0x5cf   : > { %v1226_v16 = vmul.f32 0.5, %v1225_v15 }
 0x5d1   : > { %v1227_v17 = vsub.f32 1.5, %v1226_v16 }
 0x5d3   : > { %v1228_v18 = vmul.f32 %v1648_v13, %v1227_v17 }
 0x5d5   : > { %v1232_v19 = vsel %vm1231_vm12, %v1648_v13, %v1228_v18 }
 0x5d6   : > { %v1234_v20 = vmul.f32 %v1232_v19, %v1200_v54 }
 0x5d8   : > { %v1239_v21 = vmul.f32 %v1609_v2, %v1234_v20 }
 0x5da   : > { %v1244_v22 = vadd.f32 %v1610_v4, %v1239_v21 }
 0x5dc   : > { %1246 = vst.msk [vmem:[%s607_s14 + $0x8] sm:$0xff] %vm622_vm0, %v1244_v22 }
 0x5dd   : > { %1886 = shalt.err (!%p1883_p13)
}
 0x5de   : > { %s1952_s3 = smov 128  }
 0x5df   : > { %1505 = dma.vmem_to_hbm [thread:$0]  (%p2103_p3), %s1261_s30, 256, %s1263_s21, %s1248_s28, %s1952_s3, %s1952_s3, %s1948_s17  }
 0x5e0 PF: > { %s2448_s19 = sld [smem:[#allocation21_spill]] }
 0x5e1   : > { %s2450_s7 = sld [smem:[#allocation22_spill]] }
 0x5e6   : > { %s1277_s14 = sand.u32 1, %s2448_s19  }
 0x5e7   : > { %p2451_p0 = scmp.ge.s32.totalorder %s2450_s7, 2  ;;  %s1278_s16 = scalar_lea.sflag [#allocation5], %s1277_s14 }
 0x5e9   : > { %p1531_p8 = pnand %p2451_p0, %p2058_p6 }
 0x5eb   : > { %p1532_p9 = pneg %p1531_p8 }
 0x5ed   : > { %1920 = dma.done.wait (%p1532_p9), %s1278_s16, 256  }
 0x5ee   : > { %1922 = vsyncadd (%p1532_p9), %s1278_s16, 4294967040  ;;  %s2452_s28 = sld [smem:[#allocation24_spill]]  ;;  %s2454_s25 = smov %s1929_s26 }
 0x5ef   : > { %s2453_s24 = sld [smem:[#allocation26_spill]]  ;;  %s2455_s26 = smov %s1933_s27 }
 0x5f4   : > { %p31_p12 = scmp.ge.s32.totalorder %s2452_s28, 4  }
 0x5f5   : > { %s2456_s27 = smov %s2453_s24 }
 0x5f6   :  { %33 = sbr.rel (!%p31_p12) target bundleno = 17 (0x11), region = 157 }
 0x5fb   :  { %1284 = vsyncpa [#allocation4], 1 }
 0x5fc   :  { %1286 = vsyncpa [#allocation4 + $0x1], 1 }
 0x5fd   :  { %1287 = vsyncpa [#allocation7], 1 }
 0x5fe   :  { %1289 = vsyncpa [#allocation7 + $0x1], 1 }
 0x5ff   :  { %1290 = vsyncpa [#allocation10], 1 }
 0x600   :  { %1291 = vsyncpa [#allocation13], 1 }
 0x601   :  { %1292 = vsyncpa [#allocation5], 1 }
 0x602   :  { %1294 = vsyncpa [#allocation5 + $0x1], 1 }

</bundles_post_ra>
